<compile_context>
chip_gen: v5e
topology: v5e:2x2
jax: 0.10.0
libtpu: 0.0.40
codegen_flags: <defaults>
</compile_context>

<pallas_src>
import functools

import jax
import jax.numpy as jnp
from jax.experimental import pallas as pl
from jax.experimental.pallas import tpu as pltpu


def _round_up(n, m):
    return (n + m - 1) // m * m


def _vmem_cap_bytes():
    """Generation-aware usable VMEM budget (v5e/v6e: 128 MiB/TC, v7x: 64 MiB/TC)."""
    try:
        cap = int(pltpu.get_tpu_info().vmem_capacity_bytes)
    except Exception:
        cap = 64 << 20                       # conservative fallback (v7x-sized)
    # leave headroom for compiler scratch / semaphores
    return max(32 << 20, min(cap - (16 << 20), cap * 3 // 4))


def _pick_block_b(Bp, per_row_vmem, budget_bytes):
    """Largest batch tile dividing Bp that (a) is a multiple of 16 when possible,
    (b) keeps >= ~4 grid steps once available (megacore sharding on v7x),
    (c) fits the double-buffered streamed blocks in `budget_bytes`, (d) <= 1024."""
    base = 16 if Bp % 16 == 0 else 8
    base = min(base, Bp)
    steps = Bp // base
    target_steps = 4 if steps >= 4 else (2 if steps >= 2 else 1)
    tb = base
    while True:
        nxt = tb * 2
        if Bp % nxt != 0 or nxt > 1024:
            break
        if Bp // nxt < target_steps:
            break
        if 2 * nxt * per_row_vmem > budget_bytes:
            break
        tb = nxt
    return tb


def _ensembling_linear_kernel(pw_ref, x_ref, prev_ref, w1t_ref, w2t_ref, b_ref,
                              out_ref, prevpad_ref, *,
                              num_prev, num_classes, padded_classes):
    # pw_ref:      SMEM (P,)          prev_weights (scalars)
    # x_ref:       VMEM (TB, F)       input features (incoming dtype)
    # prev_ref:    VMEM (P, TB, NC)   stacked previous head outputs, unpadded (f32)
    # w1t_ref:     VMEM (F, NCP)      classifier columns for x, transposed, bf16
    # w2t_ref:     VMEM (NCP, NCP)    classifier columns for prev_out[-1], transposed, bf16
    # b_ref:       VMEM (1, NCP)      classifier bias (f32)
    # out_ref:     VMEM (TB, NC)      f32 output block (unpadded)
    # prevpad_ref: VMEM (TB, NCP)     scratch: prev_out[-1] zero-extended to 128 lanes
    P, NC = num_prev, num_classes

    # classifier(cat([x, prev_out[-1]])) split into its two column groups.
    # bf16 cast of x happens here (VPU convert hides under the DMA pipeline).
    xb = x_ref[...].astype(jnp.bfloat16)
    cls = jnp.dot(xb, w1t_ref[...], preferred_element_type=jnp.float32)      # (TB, NCP)

    # zero-extend prev_out[-1] to the padded class width via a tiny VMEM scratch
    prevpad_ref[...] = jnp.zeros_like(prevpad_ref)
    prevpad_ref[:, :NC] = prev_ref[P - 1]
    prev_last_p = prevpad_ref[...].astype(jnp.bfloat16)                      # (TB, NCP)
    cls = cls + jnp.dot(prev_last_p, w2t_ref[...],
                        preferred_element_type=jnp.float32)
    cls = cls + b_ref[...]                                                   # bias broadcast

    # weighted_prevs = sum_p prev_weights[p] * prev_out[p]  (P tiny & static -> VPU, NC lanes)
    weighted = pw_ref[0] * prev_ref[0]
    for p in range(1, P):
        weighted = weighted + pw_ref[p] * prev_ref[p]                        # (TB, NC)

    out_ref[...] = (cls[:, :NC] + weighted).astype(out_ref.dtype)


def ensembling_linear(x, prev_out, prev_weights, w, b, *, return_features=False):
    """Pallas forward of EnsemblingLinear.

    x: (B, F) (or (B, *feat), flattened here), prev_out: sequence of (B, NC),
    prev_weights: (P, 1), w: (NC, F + NC) (nn.Linear weight), b: (NC,).
    """
    B = x.shape[0]
    x2 = x.reshape(B, -1)
    F = x2.shape[1]
    P = len(prev_out)
    NC = w.shape[0]
    assert w.shape[1] == NC + F, (w.shape, NC, F)
    NCP = _round_up(NC, 128)                 # lane-dense class axis for the resident weights

    # --- resident parameters (tiny, one-time): split columns, transpose, pad to 128 lanes
    w1t = jnp.zeros((F, NCP), jnp.bfloat16).at[:, :NC].set(w[:, :F].T.astype(jnp.bfloat16))
    w2t = jnp.zeros((NCP, NCP), jnp.bfloat16).at[:NC, :NC].set(w[:, F:].T.astype(jnp.bfloat16))
    bias = jnp.zeros((1, NCP), jnp.float32).at[0, :NC].set(b.astype(jnp.float32))

    # --- streamed activations: natural shapes, no padding of the class axis, no x cast pass
    prev_stack = jnp.stack([p.reshape(B, -1) for p in prev_out],
                           axis=0).astype(jnp.float32)                       # (P, B, NC)
    pw = jnp.asarray(prev_weights, jnp.float32).reshape(P)

    # pad the batch to a multiple of 8 so the tiled/pipelined path always applies
    Bp = max(8, _round_up(B, 8))
    if Bp != B:
        x2_k = jnp.pad(x2, ((0, Bp - B), (0, 0)))
        prev_k = jnp.pad(prev_stack, ((0, 0), (0, Bp - B), (0, 0)))
    else:
        x2_k, prev_k = x2, prev_stack

    x_itemsize = jnp.dtype(x2_k.dtype).itemsize
    Fl = _round_up(F, 128)                   # lane-padded width for VMEM accounting
    # VMEM-resident parameters (constant index_map); charge them double-buffered
    # to stay conservative on v7x's 64 MiB/TC.
    resident = F * NCP * 2 + NCP * NCP * 2 + 8 * NCP * 4
    # per-batch-row VMEM as blocks actually sit in VMEM (lane-padded):
    # x block + prev_stack block + out block + prev-pad scratch
    per_row_vmem = Fl * x_itemsize + P * NCP * 4 + NCP * 4 + NCP * 4

    cap = _vmem_cap_bytes()
    budget = max(4 << 20, cap - 2 * resident - (2 << 20))
    tb = _pick_block_b(Bp, per_row_vmem, budget)
    grid = (Bp // tb,)

    vmem_limit = int(2 * resident + 2 * tb * per_row_vmem + (2 << 20))
    vmem_limit = int(min(cap, max(16 << 20, vmem_limit)))

    kernel = functools.partial(_ensembling_linear_kernel,
                               num_prev=P, num_classes=NC, padded_classes=NCP)

    out = pl.pallas_call(
        kernel,
        out_shape=jax.ShapeDtypeStruct((Bp, NC), jnp.float32),
        grid=grid,
        in_specs=[
            pl.BlockSpec(memory_space=pltpu.SMEM),             # prev_weights (scalars)
            pl.BlockSpec((tb, F), lambda i: (i, 0)),           # x, streamed over batch
            pl.BlockSpec((P, tb, NC), lambda i: (0, i, 0)),    # prev_stack, streamed (unpadded)
            pl.BlockSpec((F, NCP), lambda i: (0, 0)),          # w1t, VMEM-resident
            pl.BlockSpec((NCP, NCP), lambda i: (0, 0)),        # w2t, VMEM-resident
            pl.BlockSpec((1, NCP), lambda i: (0, 0)),          # bias, VMEM-resident
        ],
        out_specs=pl.BlockSpec((tb, NC), lambda i: (i, 0)),    # unpadded output
        scratch_shapes=[pltpu.VMEM((tb, NCP), jnp.float32)],   # prev_out[-1] lane-pad scratch
        compiler_params=pltpu.CompilerParams(
            dimension_semantics=("parallel",),                 # megacore batch split (v7x)
            vmem_limit_bytes=vmem_limit),
    )(pw, x2_k, prev_k, w1t, w2t, bias)

    out = out[:B]
    if return_features:
        # cls_input is pure layout; keep it outside the kernel.
        cls_input = jnp.concatenate([x2, prev_out[-1].reshape(B, -1)], axis=1)
        return out, cls_input
    return out


def _reference(x, prev_out, prev_weights, w, b):
    B = x.shape[0]
    cls_in = jnp.concatenate([x.reshape(B, -1), prev_out[-1].reshape(B, -1)], axis=1)
    cls = cls_in @ w.T + b
    weighted = (jnp.stack(prev_out, axis=1) * prev_weights[None, :, :]).sum(axis=1)
    return weighted + cls


if __name__ == "__main__":
    key = jax.random.PRNGKey(0)
    input_features = (4, 16, 16)            # => F = 1024
    F = 4 * 16 * 16
    NC = 8                                  # num_classes
    P = 3                                   # num_prev_heads

    def make_case(B, k):
        kx, kp, kpw, kw, kb = jax.random.split(k, 5)
        x = jax.random.normal(kx, (B, F), jnp.float32)
        prev_out = [jax.random.normal(jax.random.fold_in(kp, i), (B, NC), jnp.float32)
                    for i in range(P)]
        # prev_weights initialized to ones in the module; randomized here so the
        # weighted-prev path is actually exercised.
        prev_weights = jax.random.normal(kpw, (P, 1), jnp.float32)
        bound = 1.0 / float((NC + F) ** 0.5)
        w = jax.random.uniform(kw, (NC, NC + F), jnp.float32, -bound, bound)
        b = jax.random.uniform(kb, (NC,), jnp.float32, -bound, bound)
        return x, prev_out, prev_weights, w, b

    # case 1: B divisible by 8 (tiled path)
    x, prev_out, prev_weights, w, b = make_case(8, key)
    out = jax.block_until_ready(ensembling_linear(x, prev_out, prev_weights, w, b))
    ref = _reference(x, prev_out, prev_weights, w, b)
    assert out.shape == (8, NC), out.shape
    assert jnp.allclose(out, ref, atol=3e-2, rtol=3e-2), (out, ref)

    # case 2: B not divisible by 8 (wrapper pads the batch), with return_features
    x, prev_out, prev_weights, w, b = make_case(6, jax.random.fold_in(key, 1))
    out, feats = ensembling_linear(x, prev_out, prev_weights, w, b, return_features=True)
    out = jax.block_until_ready(out)
    ref = _reference(x, prev_out, prev_weights, w, b)
    assert out.shape == (6, NC), out.shape
    assert feats.shape == (6, NC + F), feats.shape
    assert jnp.allclose(out, ref, atol=3e-2, rtol=3e-2), (out, ref)

    print("KERNEL_OK")
</pallas_src>

<mosaic_0001>
module attributes {stable_mosaic.version = 11 : i64} {
  func.func @_ensembling_linear_kernel(%arg0: i32, %arg1: memref<3xf32, #tpu.memory_space<smem>>, %arg2: memref<8x1024xf32, #tpu.memory_space<vmem>>, %arg3: memref<3x8x8xf32, #tpu.memory_space<vmem>>, %arg4: memref<1024x128xbf16, #tpu.memory_space<vmem>>, %arg5: memref<128x128xbf16, #tpu.memory_space<vmem>>, %arg6: memref<1x128xf32, #tpu.memory_space<vmem>>, %arg7: memref<8x8xf32, #tpu.memory_space<vmem>>, %arg8: memref<8x128xf32, #tpu.memory_space<vmem>>) attributes {dimension_semantics = [#tpu.dimension_semantics<parallel>], iteration_bounds = array<i64: 1>, scalar_prefetch = 0 : i64, scratch_operands = 1 : i64, tpu.core_type = #tpu.core_type<tc>, window_params = [{transform_indices = @transform_0, window_bounds = array<i64: 3>}, {transform_indices = @transform_1, window_bounds = array<i64: 8, 1024>}, {transform_indices = @transform_2, window_bounds = array<i64: 3, 8, 8>}, {pipeline_mode = #tpu.pipeline_mode<synchronous>, transform_indices = @transform_3, window_bounds = array<i64: 1024, 128>}, {pipeline_mode = #tpu.pipeline_mode<synchronous>, transform_indices = @transform_4, window_bounds = array<i64: 128, 128>}, {pipeline_mode = #tpu.pipeline_mode<synchronous>, transform_indices = @transform_5, window_bounds = array<i64: 1, 128>}, {transform_indices = @transform_6, window_bounds = array<i64: 8, 8>}]} {
    %c0 = arith.constant 0 : index
    %c0_0 = arith.constant 0 : index
    %0 = vector.load %arg2[%c0, %c0_0] : memref<8x1024xf32, #tpu.memory_space<vmem>>, vector<8x1024xf32>
    %1 = arith.truncf %0 : vector<8x1024xf32> to vector<8x1024xbf16>
    %c0_1 = arith.constant 0 : index
    %c0_2 = arith.constant 0 : index
    %2 = vector.load %arg4[%c0_1, %c0_2] : memref<1024x128xbf16, #tpu.memory_space<vmem>>, vector<1024x128xbf16>
    %cst = arith.constant dense<0.000000e+00> : vector<8x128xf32>
    %3 = tpu.matmul %1, %2, %cst {dimension_numbers = #tpu.dot_dimension_numbers<[1], [0], [0], [1], [0, 0, 1, 1], [], []>} : vector<8x1024xbf16>, vector<1024x128xbf16>, vector<8x128xf32> -> vector<8x128xf32>
    %cst_3 = arith.constant 0.000000e+00 : f32
    %4 = vector.broadcast %cst_3 : f32 to vector<8x128xf32>
    %c0_4 = arith.constant 0 : index
    %c0_5 = arith.constant 0 : index
    %5 = vector.load %arg8[%c0_4, %c0_5] : memref<8x128xf32, #tpu.memory_space<vmem>>, vector<8x128xf32>
    tpu.vector_store %arg8[%c0_4, %c0_5], %4 {strides = array<i32>} : memref<8x128xf32, #tpu.memory_space<vmem>>, vector<8x128xf32>,
    %c2 = arith.constant 2 : index
    %c0_6 = arith.constant 0 : index
    %c0_7 = arith.constant 0 : index
    %6 = vector.load %arg3[%c2, %c0_6, %c0_7] : memref<3x8x8xf32, #tpu.memory_space<vmem>>, vector<1x8x8xf32>
    %7 = vector.shape_cast %6 : vector<1x8x8xf32> to vector<8x8xf32>
    %c0_8 = arith.constant 0 : index
    %c0_9 = arith.constant 0 : index
    %8 = vector.load %arg8[%c0_8, %c0_9] : memref<8x128xf32, #tpu.memory_space<vmem>>, vector<8x8xf32>
    tpu.vector_store %arg8[%c0_8, %c0_9], %7 {strides = array<i32>} : memref<8x128xf32, #tpu.memory_space<vmem>>, vector<8x8xf32>,
    %c0_10 = arith.constant 0 : index
    %c0_11 = arith.constant 0 : index
    %9 = vector.load %arg8[%c0_10, %c0_11] : memref<8x128xf32, #tpu.memory_space<vmem>>, vector<8x128xf32>
    %10 = arith.truncf %9 : vector<8x128xf32> to vector<8x128xbf16>
    %c0_12 = arith.constant 0 : index
    %c0_13 = arith.constant 0 : index
    %11 = vector.load %arg5[%c0_12, %c0_13] : memref<128x128xbf16, #tpu.memory_space<vmem>>, vector<128x128xbf16>
    %cst_14 = arith.constant dense<0.000000e+00> : vector<8x128xf32>
    %12 = tpu.matmul %10, %11, %cst_14 {dimension_numbers = #tpu.dot_dimension_numbers<[1], [0], [0], [1], [0, 0, 1, 1], [], []>} : vector<8x128xbf16>, vector<128x128xbf16>, vector<8x128xf32> -> vector<8x128xf32>
    %13 = arith.addf %3, %12 : vector<8x128xf32>
    %c0_15 = arith.constant 0 : index
    %c0_16 = arith.constant 0 : index
    %14 = vector.load %arg6[%c0_15, %c0_16] : memref<1x128xf32, #tpu.memory_space<vmem>>, vector<1x128xf32>
    %15 = vector.broadcast %14 : vector<1x128xf32> to vector<8x128xf32>
    %16 = arith.addf %13, %15 : vector<8x128xf32>
    %c0_17 = arith.constant 0 : index
    %17 = memref.load %arg1[%c0_17] : memref<3xf32, #tpu.memory_space<smem>>
    %c0_18 = arith.constant 0 : index
    %c0_19 = arith.constant 0 : index
    %c0_20 = arith.constant 0 : index
    %18 = vector.load %arg3[%c0_18, %c0_19, %c0_20] : memref<3x8x8xf32, #tpu.memory_space<vmem>>, vector<1x8x8xf32>
    %19 = vector.shape_cast %18 : vector<1x8x8xf32> to vector<8x8xf32>
    %20 = vector.broadcast %17 : f32 to vector<8x8xf32>
    %21 = arith.mulf %20, %19 : vector<8x8xf32>
    %c1 = arith.constant 1 : index
    %22 = memref.load %arg1[%c1] : memref<3xf32, #tpu.memory_space<smem>>
    %c1_21 = arith.constant 1 : index
    %c0_22 = arith.constant 0 : index
    %c0_23 = arith.constant 0 : index
    %23 = vector.load %arg3[%c1_21, %c0_22, %c0_23] : memref<3x8x8xf32, #tpu.memory_space<vmem>>, vector<1x8x8xf32>
    %24 = vector.shape_cast %23 : vector<1x8x8xf32> to vector<8x8xf32>
    %25 = vector.broadcast %22 : f32 to vector<8x8xf32>
    %26 = arith.mulf %25, %24 : vector<8x8xf32>
    %27 = arith.addf %21, %26 : vector<8x8xf32>
    %c2_24 = arith.constant 2 : index
    %28 = memref.load %arg1[%c2_24] : memref<3xf32, #tpu.memory_space<smem>>
    %c2_25 = arith.constant 2 : index
    %c0_26 = arith.constant 0 : index
    %c0_27 = arith.constant 0 : index
    %29 = vector.load %arg3[%c2_25, %c0_26, %c0_27] : memref<3x8x8xf32, #tpu.memory_space<vmem>>, vector<1x8x8xf32>
    %30 = vector.shape_cast %29 : vector<1x8x8xf32> to vector<8x8xf32>
    %31 = vector.broadcast %28 : f32 to vector<8x8xf32>
    %32 = arith.mulf %31, %30 : vector<8x8xf32>
    %33 = arith.addf %27, %32 : vector<8x8xf32>
    %34 = vector.extract_strided_slice %16 {offsets = [0, 0], sizes = [8, 8], strides = [1, 1]} : vector<8x128xf32> to vector<8x8xf32>
    %35 = arith.addf %34, %33 : vector<8x8xf32>
    %c0_28 = arith.constant 0 : index
    %c0_29 = arith.constant 0 : index
    %36 = vector.load %arg7[%c0_28, %c0_29] : memref<8x8xf32, #tpu.memory_space<vmem>>, vector<8x8xf32>
    tpu.vector_store %arg7[%c0_28, %c0_29], %35 {strides = array<i32>} : memref<8x8xf32, #tpu.memory_space<vmem>>, vector<8x8xf32>,
    return
  }
  func.func @transform_0(%arg0: i32) -> i32 {
    %c0_i32 = arith.constant 0 : i32
    %c0_i32_0 = arith.constant 0 : i32
    return %c0_i32 : i32
  }
  func.func @transform_1(%arg0: i32) -> (i32, i32) {
    %c0_i32 = arith.constant 0 : i32
    %c0_i32_0 = arith.constant 0 : i32
    return %arg0, %c0_i32 : i32, i32
  }
  func.func @transform_2(%arg0: i32) -> (i32, i32, i32) {
    %c0_i32 = arith.constant 0 : i32
    %c0_i32_0 = arith.constant 0 : i32
    %c0_i32_1 = arith.constant 0 : i32
    return %c0_i32, %arg0, %c0_i32_0 : i32, i32, i32
  }
  func.func @transform_3(%arg0: i32) -> (i32, i32) {
    %c0_i32 = arith.constant 0 : i32
    %c0_i32_0 = arith.constant 0 : i32
    %c0_i32_1 = arith.constant 0 : i32
    return %c0_i32, %c0_i32_0 : i32, i32
  }
  func.func @transform_4(%arg0: i32) -> (i32, i32) {
    %c0_i32 = arith.constant 0 : i32
    %c0_i32_0 = arith.constant 0 : i32
    %c0_i32_1 = arith.constant 0 : i32
    return %c0_i32, %c0_i32_0 : i32, i32
  }
  func.func @transform_5(%arg0: i32) -> (i32, i32) {
    %c0_i32 = arith.constant 0 : i32
    %c0_i32_0 = arith.constant 0 : i32
    %c0_i32_1 = arith.constant 0 : i32
    return %c0_i32, %c0_i32_0 : i32, i32
  }
  func.func @transform_6(%arg0: i32) -> (i32, i32) {
    %c0_i32 = arith.constant 0 : i32
    %c0_i32_0 = arith.constant 0 : i32
    return %arg0, %c0_i32 : i32, i32
  }
}

</mosaic_0001>

<bundles_post_ra>
// kernel: tpu_custom_call.1
= control target key start
LH: loop header
LB: loop body
LE: loop exit
PB: predicated region body
PF: predicated region fallthrough
CT: control target
= control target key end

     0   :  { %11 = vsyncpa [#allocation6], 0  ;;  %s1445_s0 = inlined_call_operand.hbm [shape: f32[3], index: 0, kind: input, shape index: {}]   ;;  %s1446_s1 = inlined_call_operand.hbm [shape: f32[8,1024], index: 1, kind: input, shape index: {}]   ;;  %s1447_s2 = inlined_call_operand.hbm [shape: f32[3,8,8], index: 2, kind: input, shape index: {}]   ;;  %s1448_s3 = inlined_call_operand.hbm [shape: bf16[1024,128], index: 3, kind: input, shape index: {}]   ;;  %s1449_s4 = inlined_call_operand.hbm [shape: bf16[128,128], index: 4, kind: input, shape index: {}]   ;;  %s1450_s5 = inlined_call_operand.vmem [shape: f32[1,128], index: 5, kind: input, shape index: {}]   ;;  %s1451_s6 = inlined_call_operand.hbm [shape: f32[8,8], index: 6, kind: output, shape index: {}]  }
   0x1   :  { %12 = vsyncpa [#allocation4], 0 }
   0x2   :  { %13 = vsyncpa [#allocation9], 0 }
   0x3   :  { %14 = vsyncpa [#allocation12], 0  ;;  %s40_s23 = sshll.u32 %s1447_s2, 4  ;;  %s41_s23 = int_to_ptr.hbm [resolvable:$true] %s40_s23 }
   0x4   :  { %15 = vsyncpa [#allocation5], 0  ;;  %s1372_s24 = smov [#allocation8]   ;;  %s21_s28 = sshll.u32 %s1445_s0, 4  ;;  %s22_s28 = int_to_ptr.hbm [resolvable:$true] %s21_s28 }
   0x5   :  { %s42_s25 = sshll.u32 %s1372_s24, 4  ;;  %s1373_s29 = smov 128   ;;  %s43_s25 = int_to_ptr.vmem [resolvable:$true] %s42_s25 }
   0x6   :  { %s1374_s30 = smov 8   ;;  %s1375_s7 = smov [#allocation3]  }
   0x7   :  { %48 = dma.hbm_to_vmem [thread:$0]  %s41_s23, 384, %s43_s25, [#allocation9], %s1373_s29, %s1373_s29, %s1374_s30  }
   0x8   :  { %24 = dma.hbm_to_smem %s22_s28, 16, %s1375_s7, [#allocation6]  }
   0x9   :  { %s30_s10 = sshll.u32 %s1446_s1, 4  ;;  %s1376_s2 = smov [#allocation7]   ;;  %s31_s10 = int_to_ptr.hbm [resolvable:$true] %s30_s10 }
   0xa   :  { %s32_s11 = sshll.u32 %s1376_s2, 4  ;;  %s53_s14 = sshll.u32 %s1448_s3, 4  ;;  %s33_s11 = int_to_ptr.vmem [resolvable:$true] %s32_s11  ;;  %s54_s14 = int_to_ptr.hbm [resolvable:$true] %s53_s14 }
   0xb   :  { %35 = dma.hbm_to_vmem [thread:$0]  %s31_s10, 1024, %s33_s11, [#allocation4]  }
   0xc   :  { %s1377_s0 = smov [#allocation10]   ;;  %s1378_s16 = smov 64  }
   0xd   :  { %s55_s15 = sshll.u32 %s1377_s0, 4  ;;  %s1379_s17 = smov 4   ;;  %s56_s15 = int_to_ptr.vmem [resolvable:$true] %s55_s15 }
   0xe   :  { %61 = dma.hbm_to_vmem [thread:$0]  %s54_s14, 8192, %s56_s15, [#allocation9], %s1378_s16, %s1378_s16, %s1379_s17  }
   0xf   :  { %s66_s1 = sshll.u32 %s1449_s4, 4  ;;  %s1380_s20 = smov [#allocation11]   ;;  %s67_s1 = int_to_ptr.hbm [resolvable:$true] %s66_s1 }
  0x10   :  { %s68_s21 = sshll.u32 %s1380_s20, 4  ;;  %s69_s21 = int_to_ptr.vmem [resolvable:$true] %s68_s21 }
  0x11   :  { %74 = dma.hbm_to_vmem [thread:$0]  %s67_s1, 1024, %s69_s21, [#allocation12], %s1378_s16, %s1378_s16, %s1379_s17  }
  0x12   :  { %1362 = dma.done.wait [#allocation6], 16  }
  0x13   :  { %1363 = vsyncadd [#allocation6], 4294967280 }
  0x14   :  { %1364 = dma.done.wait [#allocation4], 1024  }
  0x15   :  { %1365 = vsyncadd [#allocation4], 4294966272 }
  0x16   :  { %1366 = dma.done.wait [#allocation9], 8576  }
  0x17   :  { %1367 = vsyncadd [#allocation9], 4294958720 }
  0x18   :  { %1368 = dma.done.wait [#allocation12], 1024  }
  0x19   :  { %1369 = vsyncadd [#allocation12], 4294966272 }
  0x1a   :  { %97 = sfence }
  0x1b   :  { %v1217_v0 = vld [vmem:[#allocation11 + $0x38] sm:$0xff]  ;;  %v1216_v4 = vld [vmem:[#allocation11 + $0x30] sm:$0xff]  ;;  %v1215_v8 = vld [vmem:[#allocation11 + $0x28] sm:$0xff]  ;;  %v1381_v10 = vmov 0.0   ;;  %vm245_vm0 = vcmask 64512   ;;  %s819_s3 = sld [smem:[#allocation3]] }
  0x1c   :  { %v1161_v1 = vld [vmem:[#allocation10 + $0x78] sm:$0xff]  ;;  %313 = vmatpush.bf16.msra.mxu0 %v1217_v0  ;;  %v1160_v5 = vld [vmem:[#allocation10 + $0x70] sm:$0xff]  ;;  %v1159_v9 = vld [vmem:[#allocation10 + $0x68] sm:$0xff]  ;;  %242 = vst [vmem:[#allocation2] sm:$0xff] %v1381_v10  ;;  %s1144_s4 = sld [smem:[#allocation3 + $0x1]]  ;;  %s1382_s25 = smov [#allocation13]  }
  0x1d   :  { %v1169_v2 = vld [vmem:[#allocation10 + $0xb8] sm:$0xff]  ;;  %723 = vmatpush.bf16.msra.mxu2 %v1161_v1  ;;  %v1168_v6 = vld [vmem:[#allocation10 + $0xb0] sm:$0xff]  ;;  %v1167_v11 = vld [vmem:[#allocation10 + $0xa8] sm:$0xff]  ;;  %s1145_s22 = sld [smem:[#allocation3 + $0x2]]  ;;  %s841_s26 = sshll.u32 %s1382_s25, 4  ;;  %s842_s26 = int_to_ptr.vmem [resolvable:$true] %s841_s26 }
  0x1e   :  { %v1153_v3 = vld [vmem:[#allocation10 + $0x38] sm:$0xff]  ;;  %736 = vmatpush.bf16.msra.mxu3 %v1169_v2  ;;  %v1152_v7 = vld [vmem:[#allocation10 + $0x30] sm:$0xff]  ;;  %v1151_v12 = vld [vmem:[#allocation10 + $0x28] sm:$0xff]  ;;  %s843_s29 = sshll.u32 %s1451_s6, 4  ;;  %s844_s29 = int_to_ptr.hbm [resolvable:$true] %s843_s29 }
  0x1f   :  { %710 = vmatpush.bf16.msra.mxu1 %v1153_v3  ;;  %v1214_v13 = vld [vmem:[#allocation11 + $0x20] sm:$0xff]  ;;  %v1213_v17 = vld [vmem:[#allocation11 + $0x18] sm:$0xff]  ;;  %v1212_v22 = vld [vmem:[#allocation11 + $0x10] sm:$0xff] }
  0x20   :  { %314 = vmatpush.bf16.msra.mxu0 %v1216_v4  ;;  %v1158_v14 = vld [vmem:[#allocation10 + $0x60] sm:$0xff]  ;;  %v1157_v18 = vld [vmem:[#allocation10 + $0x58] sm:$0xff]  ;;  %v1156_v23 = vld [vmem:[#allocation10 + $0x50] sm:$0xff] }
  0x21   :  { %724 = vmatpush.bf16.msra.mxu2 %v1160_v5  ;;  %v1166_v15 = vld [vmem:[#allocation10 + $0xa0] sm:$0xff]  ;;  %v1165_v19 = vld [vmem:[#allocation10 + $0x98] sm:$0xff]  ;;  %v1164_v24 = vld [vmem:[#allocation10 + $0x90] sm:$0xff] }
  0x22   :  { %737 = vmatpush.bf16.msra.mxu3 %v1168_v6  ;;  %v1150_v16 = vld [vmem:[#allocation10 + $0x20] sm:$0xff]  ;;  %v1149_v20 = vld [vmem:[#allocation10 + $0x18] sm:$0xff]  ;;  %v1148_v25 = vld [vmem:[#allocation10 + $0x10] sm:$0xff] }
  0x23   :  { %711 = vmatpush.bf16.msra.mxu1 %v1152_v7  ;;  %v1433_v21 = vld [vmem:[#allocation8 + $0x10] sm:$0xff]  ;;  %v1211_v26 = vld [vmem:[#allocation11 + $0x8] sm:$0xff]  ;;  %v1210_v30 = vld [vmem:[#allocation11] sm:$0xff] }
  0x24   :  { %315 = vmatpush.bf16.msra.mxu0 %v1215_v8  ;;  %246 = vst.msk [vmem:[#allocation2] sm:$0xff] %vm245_vm0, %v1433_v21  ;;  %v1155_v27 = vld [vmem:[#allocation10 + $0x48] sm:$0xff]  ;;  %v1154_v31 = vld [vmem:[#allocation10 + $0x40] sm:$0xff]  ;;  %v1177_v32 = vld [vmem:[#allocation10 + $0xf8] sm:$0xff] }
  0x25   :  { %725 = vmatpush.bf16.msra.mxu2 %v1159_v9  ;;  %v1163_v28 = vld [vmem:[#allocation10 + $0x88] sm:$0xff]  ;;  %v1193_v33 = vld [vmem:[#allocation10 + $0x178] sm:$0xff]  ;;  %v99_v34 = vld [vmem:[#allocation7 + $0x8] sm:$0xff] }
  0x26   :  { %738 = vmatpush.bf16.msra.mxu3 %v1167_v11  ;;  %v1147_v29 = vld [vmem:[#allocation10 + $0x8] sm:$0xff]  ;;  %v1162_v36 = vld [vmem:[#allocation10 + $0x80] sm:$0xff]  ;;  %v1201_v37 = vld [vmem:[#allocation10 + $0x1b8] sm:$0xff]  ;;  %v107_v42 = vpack.c.bf16 %v99_v34, %v99_v34 }
  0x27   :  { %712 = vmatpush.bf16.msra.mxu1 %v1151_v12  ;;  %v1146_v38 = vld [vmem:[#allocation10] sm:$0xff]  ;;  %v1185_v39 = vld [vmem:[#allocation10 + $0x138] sm:$0xff]  ;;  %v98_v41 = vld [vmem:[#allocation7] sm:$0xff] }
  0x28   :  { %316 = vmatpush.bf16.msra.mxu0 %v1214_v13  ;;  %v100_v40 = vld [vmem:[#allocation7 + $0x10] sm:$0xff]  ;;  %v1176_v44 = vld [vmem:[#allocation10 + $0xf0] sm:$0xff]  ;;  %v106_v47 = vpack.c.bf16 %v98_v41, %v98_v41  ;;  %v1175_v50 = vld [vmem:[#allocation10 + $0xe8] sm:$0xff] }
  0x29   :  { %726 = vmatpush.bf16.msra.mxu2 %v1158_v14  ;;  %v1192_v45 = vld [vmem:[#allocation10 + $0x170] sm:$0xff]  ;;  %v108_v46 = vpack.c.bf16 %v100_v40, %v100_v40  ;;  %v1191_v51 = vld [vmem:[#allocation10 + $0x168] sm:$0xff]  ;;  %v1174_v54 = vld [vmem:[#allocation10 + $0xe0] sm:$0xff] }
  0x2a   :  { %739 = vmatpush.bf16.msra.mxu3 %v1166_v15  ;;  %v1200_v48 = vld [vmem:[#allocation10 + $0x1b0] sm:$0xff]  ;;  %v1199_v52 = vld [vmem:[#allocation10 + $0x1a8] sm:$0xff]  ;;  %v1190_v55 = vld [vmem:[#allocation10 + $0x160] sm:$0xff] }
  0x2b   :  { %713 = vmatpush.bf16.msra.mxu1 %v1150_v16  ;;  %v247_v35 = vld [vmem:[#allocation2] sm:$0xff]  ;;  %v1184_v49 = vld [vmem:[#allocation10 + $0x130] sm:$0xff]  ;;  %v1183_v53 = vld [vmem:[#allocation10 + $0x128] sm:$0xff] }
  0x2c   :  { %317 = vmatpush.bf16.msra.mxu0 %v1213_v17  ;;  %v248_v43 = vpack.c.bf16 %v247_v35, %v247_v35  ;;  %v1198_v56 = vld [vmem:[#allocation10 + $0x1a0] sm:$0xff]  ;;  %v1173_v58 = vld [vmem:[#allocation10 + $0xd8] sm:$0xff]  ;;  %v1172_v62 = vld [vmem:[#allocation10 + $0xd0] sm:$0xff] }
  0x2d   :  { %727 = vmatpush.bf16.msra.mxu2 %v1157_v18  ;;  %v1182_v57 = vld [vmem:[#allocation10 + $0x120] sm:$0xff]  ;;  %v1189_v59 = vld [vmem:[#allocation10 + $0x158] sm:$0xff]  ;;  %v1188_v63 = vld [vmem:[#allocation10 + $0x150] sm:$0xff] }
  0x2e   :  { %740 = vmatpush.bf16.msra.mxu3 %v1165_v19  ;;  %v1197_v60 = vld [vmem:[#allocation10 + $0x198] sm:$0xff]  ;;  %v1196_v0 = vld [vmem:[#allocation10 + $0x190] sm:$0xff]  ;;  %v1171_v2 = vld [vmem:[#allocation10 + $0xc8] sm:$0xff] }
  0x2f   :  { %714 = vmatpush.bf16.msra.mxu1 %v1149_v20  ;;  %v1181_v61 = vld [vmem:[#allocation10 + $0x118] sm:$0xff]  ;;  %v1180_v1 = vld [vmem:[#allocation10 + $0x110] sm:$0xff]  ;;  %v1187_v3 = vld [vmem:[#allocation10 + $0x148] sm:$0xff] }
  0x30   :  { %318 = vmatpush.bf16.msra.mxu0 %v1212_v22  ;;  %v1195_v4 = vld [vmem:[#allocation10 + $0x188] sm:$0xff]  ;;  %v1170_v6 = vld [vmem:[#allocation10 + $0xc0] sm:$0xff]  ;;  %v103_v8 = vld [vmem:[#allocation7 + $0x28] sm:$0xff] }
  0x31   :  { %728 = vmatpush.bf16.msra.mxu2 %v1156_v23  ;;  %v1179_v5 = vld [vmem:[#allocation10 + $0x108] sm:$0xff]  ;;  %v1186_v7 = vld [vmem:[#allocation10 + $0x140] sm:$0xff]  ;;  %v1209_v10 = vld [vmem:[#allocation10 + $0x1f8] sm:$0xff]  ;;  %v111_v14 = vpack.c.bf16 %v103_v8, %v103_v8 }
  0x32   :  { %741 = vmatpush.bf16.msra.mxu3 %v1164_v24  ;;  %v101_v9 = vld [vmem:[#allocation7 + $0x18] sm:$0xff]  ;;  %v104_v13 = vld [vmem:[#allocation7 + $0x30] sm:$0xff]  ;;  %v102_v16 = vld [vmem:[#allocation7 + $0x20] sm:$0xff] }
  0x33   :  { %715 = vmatpush.bf16.msra.mxu1 %v1148_v25  ;;  %v1194_v11 = vld [vmem:[#allocation10 + $0x180] sm:$0xff]  ;;  %v109_v15 = vpack.c.bf16 %v101_v9, %v101_v9  ;;  %v1208_v17 = vld [vmem:[#allocation10 + $0x1f0] sm:$0xff]  ;;  %v112_v18 = vpack.c.bf16 %v104_v13, %v104_v13  ;;  %v110_v19 = vpack.c.bf16 %v102_v16, %v102_v16  ;;  %v1207_v20 = vld [vmem:[#allocation10 + $0x1e8] sm:$0xff] }
  0x34   :  { %319 = vmatpush.bf16.msra.mxu0 %v1211_v26  ;;  %v1178_v12 = vld [vmem:[#allocation10 + $0x100] sm:$0xff]  ;;  %v1205_v23 = vld [vmem:[#allocation10 + $0x1d8] sm:$0xff]  ;;  %v1204_v24 = vld [vmem:[#allocation10 + $0x1d0] sm:$0xff] }
  0x35   :  { %729 = vmatpush.bf16.msra.mxu2 %v1155_v27  ;;  %v1206_v22 = vld [vmem:[#allocation10 + $0x1e0] sm:$0xff]  ;;  %v1203_v25 = vld [vmem:[#allocation10 + $0x1c8] sm:$0xff] }
  0x36   :  { %742 = vmatpush.bf16.msra.mxu3 %v1163_v28  ;;  %v1202_v26 = vld [vmem:[#allocation10 + $0x1c0] sm:$0xff] }
  0x37   :  { %716 = vmatpush.bf16.msra.mxu1 %v1147_v29  ;;  %v105_v27 = vld [vmem:[#allocation7 + $0x38] sm:$0xff] }
  0x38   :  { %320 = vmatpush.bf16.msra.mxu0 %v1210_v30  ;;  %v113_v28 = vpack.c.bf16 %v105_v27, %v105_v27 }
  0x39   :  { %730 = vmatpush.bf16.msra.mxu2 %v1154_v31 }
  0x3a   :  { %743 = vmatpush.bf16.msra.mxu3 %v1162_v36 }
  0x3b   :  { %717 = vmatpush.bf16.msra.mxu1 %v1146_v38  ;;  %321 = vmatmul.bf16.vlgmr.msra.gmra.mxu0 %v248_v43 }
  0x3c   :  { %749 = vmatpush.bf16.msrb.mxu0 %v1177_v32  ;;  %731 = vmatmul.bf16.vlgmr.msra.gmra.mxu2 %v107_v42 }
  0x3d   :  { %775 = vmatpush.bf16.msrb.mxu2 %v1193_v33  ;;  %744 = vmatmul.bf16.vlgmr.msra.gmra.mxu3 %v108_v46 }
  0x3e   :  { %788 = vmatpush.bf16.msrb.mxu3 %v1201_v37  ;;  %718 = vmatmul.bf16.vlgmr.msra.gmra.mxu1 %v106_v47 }
  0x3f   :  { %762 = vmatpush.bf16.msrb.mxu1 %v1185_v39 }
  0x40   :  { %750 = vmatpush.bf16.msrb.mxu0 %v1176_v44 }
  0x41   :  { %776 = vmatpush.bf16.msrb.mxu2 %v1192_v45 }
  0x42   :  { %789 = vmatpush.bf16.msrb.mxu3 %v1200_v48 }
  0x43   :  { %763 = vmatpush.bf16.msrb.mxu1 %v1184_v49  ;;  %v820_v49 = vld [vmem:[#allocation8] sm:$0xff] }
  0x44   :  { %751 = vmatpush.bf16.msrb.mxu0 %v1175_v50  ;;  %v821_v50 = vstv %s819_s3 }
  0x45   :  { %777 = vmatpush.bf16.msrb.mxu2 %v1191_v51  ;;  %v825_v51 = vld [vmem:[#allocation8 + $0x8] sm:$0xff] }
  0x46   :  { %790 = vmatpush.bf16.msrb.mxu3 %v1199_v52  ;;  %v826_v52 = vstv %s1144_s4 }
  0x47   :  { %764 = vmatpush.bf16.msrb.mxu1 %v1183_v53 }
  0x48   :  { %752 = vmatpush.bf16.msrb.mxu0 %v1174_v54  ;;  %v822_v54 = vmul.f32 %v821_v50, %v820_v49 }
  0x49   :  { %778 = vmatpush.bf16.msrb.mxu2 %v1190_v55  ;;  %v827_v55 = vmul.f32 %v826_v52, %v825_v51 }
  0x4a   :  { %791 = vmatpush.bf16.msrb.mxu3 %v1198_v56  ;;  %v831_v56 = vstv %s1145_s22 }
  0x4b   :  { %765 = vmatpush.bf16.msrb.mxu1 %v1182_v57 }
  0x4c   :  { %753 = vmatpush.bf16.msrb.mxu0 %v1173_v58  ;;  %v828_v58 = vadd.f32 %v827_v55, %v822_v54 }
  0x4d   :  { %779 = vmatpush.bf16.msrb.mxu2 %v1189_v59  ;;  %v832_v59 = vmul.f32 %v831_v56, %v1433_v21 }
  0x4e   :  { %792 = vmatpush.bf16.msrb.mxu3 %v1197_v60 }
  0x4f   :  { %766 = vmatpush.bf16.msrb.mxu1 %v1181_v61  ;;  %v1229_v61 = vld [vmem:[%s1450_s5] ss:$0 sm:$0xff] }
  0x50   :  { %754 = vmatpush.bf16.msrb.mxu0 %v1172_v62 }
  0x51   :  { %780 = vmatpush.bf16.msrb.mxu2 %v1188_v63 }
  0x52   :  { %793 = vmatpush.bf16.msrb.mxu3 %v1196_v0  ;;  %v833_v0 = vadd.f32 %v832_v59, %v828_v58 }
  0x53   :  { %767 = vmatpush.bf16.msrb.mxu1 %v1180_v1 }
  0x54   :  { %755 = vmatpush.bf16.msrb.mxu0 %v1171_v2 }
  0x55   :  { %781 = vmatpush.bf16.msrb.mxu2 %v1187_v3 }
  0x56   :  { %794 = vmatpush.bf16.msrb.mxu3 %v1195_v4 }
  0x57   :  { %768 = vmatpush.bf16.msrb.mxu1 %v1179_v5 }
  0x58   :  { %756 = vmatpush.bf16.msrb.mxu0 %v1170_v6 }
  0x59   :  { %782 = vmatpush.bf16.msrb.mxu2 %v1186_v7 }
  0x5a   :  { %795 = vmatpush.bf16.msrb.mxu3 %v1194_v11 }
  0x5b   :  { %769 = vmatpush.bf16.msrb.mxu1 %v1178_v12  ;;  %757 = vmatmul.bf16.vlgmr.msrb.gmra.mxu0 %v109_v15 }
  0x5c   :  { %801 = vmatpush.bf16.msra.mxu0 %v1209_v10  ;;  %783 = vmatmul.bf16.vlgmr.msrb.gmra.mxu2 %v111_v14 }
  0x5d   :  { %796 = vmatmul.bf16.vlgmr.msrb.gmra.mxu3 %v112_v18 }
  0x5e   :  { %770 = vmatmul.bf16.vlgmr.msrb.gmra.mxu1 %v110_v19 }
  0x60   :  { %802 = vmatpush.bf16.msra.mxu0 %v1208_v17 }
  0x64   :  { %803 = vmatpush.bf16.msra.mxu0 %v1207_v20 }
  0x68   :  { %804 = vmatpush.bf16.msra.mxu0 %v1206_v22 }
  0x6c   :  { %805 = vmatpush.bf16.msra.mxu0 %v1205_v23 }
  0x70   :  { %806 = vmatpush.bf16.msra.mxu0 %v1204_v24 }
  0x74   :  { %807 = vmatpush.bf16.msra.mxu0 %v1203_v25 }
  0x78   :  { %808 = vmatpush.bf16.msra.mxu0 %v1202_v26 }
  0x7b   :  { %809 = vmatmul.bf16.vlgmr.msra.gmra.mxu0 %v113_v28 }
  0xb8   :  { %v322_v29 = vpop.f32.mrf.mxu0 }
  0xbb   :  { %v719_v30 = vpop.f32.mrf.mxu1 }
  0xbc   :  { %v720_v39 = vadd.f32 %v719_v30, %v322_v29 }
  0xbf   :  { %v732_v31 = vpop.f32.mrf.mxu2 }
  0xc0   :  { %v745_v32 = vpop.f32.mrf.mxu3  ;;  %v324_v33 = vpop.f32.mrf.mxu0  ;;  %v733_v41 = vadd.f32 %v732_v31, %v720_v39 }
  0xc2   :  { %v746_v45 = vadd.f32 %v745_v32, %v733_v41 }
  0xc3   :  { %v721_v34 = vpop.f32.mrf.mxu1 }
  0xc7   :  { %v734_v35 = vpop.f32.mrf.mxu2 }
  0xc8   :  { %v747_v36 = vpop.f32.mrf.mxu3 }
  0xd8   :  { %v758_v37 = vpop.f32.mrf.mxu0 }
  0xd9   :  { %v759_v47 = vadd.f32 %v758_v37, %v746_v45 }
  0xdb   :  { %v771_v38 = vpop.f32.mrf.mxu1 }
  0xdc   :  { %v772_v53 = vadd.f32 %v771_v38, %v759_v47 }
  0xdf   :  { %v784_v40 = vpop.f32.mrf.mxu2 }
  0xe0   :  { %v797_v42 = vpop.f32.mrf.mxu3  ;;  %v760_v43 = vpop.f32.mrf.mxu0  ;;  %v785_v57 = vadd.f32 %v784_v40, %v772_v53 }
  0xe2   :  { %v798_v60 = vadd.f32 %v797_v42, %v785_v57 }
  0xe3   :  { %v773_v44 = vpop.f32.mrf.mxu1 }
  0xe7   :  { %v786_v46 = vpop.f32.mrf.mxu2 }
  0xe8   :  { %v799_v48 = vpop.f32.mrf.mxu3 }
  0xf8   :  { %v810_v62 = vpop.f32.mrf.mxu0 }
  0xf9   :  { %v811_v63 = vadd.f32 %v810_v62, %v798_v60 }
  0xfb   :  { %v818_v1 = vadd.f32 %v1229_v61, %v811_v63 }
  0xfd   :  { %v834_v2 = vadd.f32 %v833_v0, %v818_v1 }
  0xff   :  { %835 = vst.msk [vmem:[#allocation13] sm:$0xff] %vm245_vm0, %v834_v2 }
 0x100   :  { %v812_v21 = vpop.f32.mrf.mxu0  ;;  %846 = dma.vmem_to_hbm [thread:$0]  %s842_s26, 128, %s844_s29, [#allocation5]  }
 0x101   :  { %1370 = dma.done.wait [#allocation5], 128  }
 0x102   :  { %1371 = vsyncadd [#allocation5], 4294967168 }
 0x103   :  { %851 = vsyncpa [#allocation4], 1 }
 0x104   :  { %852 = vsyncpa [#allocation9], 1 }
 0x105   :  { %853 = vsyncpa [#allocation12], 1 }
 0x106   :  { %854 = vsyncpa [#allocation5], 1 }
 0x107   :  { %855 = vsyncpa [#allocation6], 1 }

</bundles_post_ra>
